<compile_context>
chip_gen: v7x
topology: tpu7x:2x2x1
jax: 0.10.0
libtpu: 0.0.40
codegen_flags: <defaults>
</compile_context>

<pallas_src>
import functools
import math

import jax
import jax.numpy as jnp
from jax.experimental import pallas as pl
from jax.experimental.pallas import tpu as pltpu

LN_EPS = 1e-5  # torch.nn.LayerNorm default


def _layernorm(x, gamma, beta):
    mu = jnp.mean(x, axis=-1, keepdims=True)
    var = jnp.mean(jnp.square(x - mu), axis=-1, keepdims=True)
    return (x - mu) * jax.lax.rsqrt(var + LN_EPS) * gamma + beta


def _vmem_limit_bytes(frac=0.75, fallback=48 * 1024 * 1024):
    # Scoped-VMEM cap derived from the chip: 128 MiB (v5e/v6e) -> ~96 MiB,
    # 64 MiB (v7x) -> ~48 MiB.  Falls back to the conservative v7x value.
    try:
        return int(frac * pltpu.get_tpu_info().vmem_capacity_bytes)
    except Exception:
        return fallback


# --------------------------- kernel 1: instance scoring ---------------------------
def score_kernel(x_ref, g_ref, b_ref, w1_ref, b1_ref, w2_ref, b2_ref, out_ref):
    # x_ref: (TN, D) f32 tile of one bag;  out_ref: (1, TN) f32 (lane-dense).
    x = x_ref[...]
    xn = _layernorm(x, g_ref[...], b_ref[...])                         # f32 on VPU
    h = jnp.dot(xn.astype(jnp.bfloat16), w1_ref[...],                  # bf16 MXU, f32 acc
                preferred_element_type=jnp.float32) + b1_ref[...]      # (TN, Dh)
    # TODO(synk): torch.nn.GELU() defaults to the exact erf GELU; the tanh approximation
    # (~1e-3 deviation) is used here for guaranteed Mosaic lowering.
    h = jax.nn.gelu(h, approximate=True)
    # Linear(Dh, 1) as an MXU contraction: (1, Dh) x (TN, Dh)^T -> (1, TN) lane-dense.
    s = jax.lax.dot_general(
        w2_ref[...], h.astype(jnp.bfloat16),
        dimension_numbers=(((1,), (1,)), ((), ())),
        preferred_element_type=jnp.float32)                            # (1, TN)
    out_ref[...] = jax.nn.sigmoid(s + b2_ref[...])


# ----------------------- kernel 2: shared-LN MHA stack ----------------------------
def transformer_kernel(w_ref, x_ref, g_ref, b_ref,
                       wq_ref, bq_ref, wk_ref, bk_ref, wv_ref, bv_ref,
                       wo_ref, bo_ref, out_ref,
                       *, num_layers, num_heads, head_dim, seq_len):
    # x_ref: (TB, Sp, D) f32 = [cls ; top-k instances ; zero padding] for TB bags.
    # w_ref: (TB, Sp, 1) per-row gate weight (1.0 for cls, topk_w for instances, 0 pad).
    # out_ref: (TB, 1, D) — only the cls row is ever consumed downstream.
    TB, Sp, D = x_ref.shape
    H, Dh = num_heads, head_dim

    x = x_ref[...] * w_ref[...]                   # gate scaling fused into the kernel
    g = g_ref[...]
    b = b_ref[...]
    z0 = _layernorm(x, g, b)                      # _z in the reference module

    # Mask padded key positions (>= seq_len); padded query rows are never read.
    key_idx = jax.lax.broadcasted_iota(jnp.int32, (1, 1, Sp), 2)
    key_mask = key_idx < seq_len                  # (1, 1, Sp)

    def mha(att, l, q_rows):
        # q_rows == Sp for intermediate layers; 1 (cls query only) for the last layer.
        m = att.reshape(TB * Sp, D).astype(jnp.bfloat16)
        k = (jnp.dot(m, wk_ref[l], preferred_element_type=jnp.float32)
             + bk_ref[l]).astype(jnp.bfloat16).reshape(TB, Sp, D)
        v = (jnp.dot(m, wv_ref[l], preferred_element_type=jnp.float32)
             + bv_ref[l]).astype(jnp.bfloat16).reshape(TB, Sp, D)
        if q_rows == Sp:
            mq = m
        else:
            mq = att[:, :q_rows, :].reshape(TB * q_rows, D).astype(jnp.bfloat16)
        # wq / bq already carry the 1/sqrt(head_dim) factor (folded at param time).
        q = (jnp.dot(mq, wq_ref[l], preferred_element_type=jnp.float32)
             + bq_ref[l]).astype(jnp.bfloat16).reshape(TB, q_rows, D)

        # TODO(synk): per-head lane slices; an all-heads batched 'bqhd,bkhd->bhqk'
        # einsum would remove O(H) relayouts when head_dim < 128, but multi-batch-dim
        # dot_general lowering on Mosaic is not guaranteed, so the 3-D form is kept.
        ctx_heads = []
        for h in range(H):                        # static unroll over heads
            sl = slice(h * Dh, (h + 1) * Dh)
            logits = jnp.einsum("bqd,bkd->bqk", q[..., sl], k[..., sl],
                                preferred_element_type=jnp.float32)   # (TB, q_rows, Sp)
            logits = jnp.where(key_mask, logits, jnp.float32(-1e30))  # mask kept in f32
            p = jax.nn.softmax(logits, axis=-1)
            ctx_heads.append(jnp.einsum("bqk,bkd->bqd",
                                        p.astype(jnp.bfloat16), v[..., sl],
                                        preferred_element_type=jnp.float32))
        # Fused out-projection: concat per-head contexts, ONE D-deep matmul.
        ctx = jnp.concatenate(ctx_heads, axis=-1).reshape(TB * q_rows, D)
        o = jnp.dot(ctx.astype(jnp.bfloat16), wo_ref[l],
                    preferred_element_type=jnp.float32) + bo_ref[l]
        return o.reshape(TB, q_rows, D)

    att = z0
    for l in range(num_layers - 1):               # static unroll; full-sequence layers
        att = _layernorm(z0 + mha(att, l, Sp), g, b)

    # Last layer specialized to the cls query (the only row consumed downstream):
    # Q-proj / attention / out-proj for non-cls rows is dead work and is skipped.
    if num_layers >= 1:
        o_cls = mha(att, num_layers - 1, 1)                           # (TB, 1, D)
        cls_att = _layernorm(z0[:, :1, :] + o_cls, g, b)
    else:
        cls_att = z0[:, :1, :]
    out_ref[...] = cls_att                                            # cls row only


# ----------------------------------- params --------------------------------------
def init_params(key, input_dim, num_heads, num_layers):
    D = input_dim
    Dh = D // num_heads
    ks = jax.random.split(key, 7)

    def nrm(k, shape, scale=0.02):
        return scale * jax.random.normal(k, shape, jnp.float32)

    q_scale = 1.0 / math.sqrt(Dh)
    return dict(
        cls_token=nrm(ks[0], (1, 1, D), scale=1.0),              # torch.randn
        ln_g=jnp.ones((1, D), jnp.float32),
        ln_b=jnp.zeros((1, D), jnp.float32),
        aw_ln_g=jnp.ones((1, D), jnp.float32),
        aw_ln_b=jnp.zeros((1, D), jnp.float32),
        # matmul weights stored bf16 (halves VMEM/HBM traffic; f32 accumulation in-kernel)
        aw_w1=nrm(ks[1], (D, Dh)).astype(jnp.bfloat16),          # Linear(D, D//H)
        aw_b1=jnp.zeros((1, Dh), jnp.float32),
        aw_w2=nrm(ks[2], (1, Dh)).astype(jnp.bfloat16),          # Linear(Dh, 1), transposed
        aw_b2=jnp.zeros((1, 1), jnp.float32),
        # MHA in_proj split into Q/K/V.  The 1/sqrt(head_dim) attention scale is folded
        # into the Q projection (weight scaled in f32 before the bf16 cast; bias would
        # be scaled the same way — zeros here).
        wq=(nrm(ks[3], (num_layers, D, D)) * q_scale).astype(jnp.bfloat16),
        bq=jnp.zeros((num_layers, 1, D), jnp.float32),
        wk=nrm(ks[4], (num_layers, D, D)).astype(jnp.bfloat16),
        bk=jnp.zeros((num_layers, 1, D), jnp.float32),
        wv=nrm(ks[5], (num_layers, D, D)).astype(jnp.bfloat16),
        bv=jnp.zeros((num_layers, 1, D), jnp.float32),
        wo=nrm(ks[6], (num_layers, D, D)).astype(jnp.bfloat16),  # MHA out_proj
        bo=jnp.zeros((num_layers, 1, D), jnp.float32),
    )


# ---------------------------------- forward ---------------------------------------
def abmil_forward(x, params, *, topk, num_heads, num_layers):
    assert num_layers >= 1
    B, N, D = x.shape
    Dh = D // num_heads
    const1 = pl.Buffered(1)   # grid-invariant weights: single buffer, no double-buffering
    vmem_limit = _vmem_limit_bytes()

    # -------- instance scoring: grid over (bag, instance tile), lane-dense output --------
    # TN=512 keeps the double-buffered x tile at 2*512*D*4 bytes, well inside v7x's
    # 64 MiB VMEM; v5e/v6e could go larger but 512-row tiles already sit near roofline.
    if N <= 512:
        TN, Np = N, N
    else:
        TN = 512
        Np = ((N + TN - 1) // TN) * TN
    x_p = x if Np == N else jnp.pad(x, ((0, 0), (0, Np - N), (0, 0)))

    w = pl.pallas_call(
        score_kernel,
        out_shape=jax.ShapeDtypeStruct((B, 1, Np), jnp.float32),
        grid=(B, Np // TN),
        in_specs=[
            pl.BlockSpec((pl.Squeezed(), TN, D), lambda bi, ni: (bi, ni, 0)),
            pl.BlockSpec((1, D), lambda bi, ni: (0, 0), pipeline_mode=const1),
            pl.BlockSpec((1, D), lambda bi, ni: (0, 0), pipeline_mode=const1),
            pl.BlockSpec((D, Dh), lambda bi, ni: (0, 0), pipeline_mode=const1),
            pl.BlockSpec((1, Dh), lambda bi, ni: (0, 0), pipeline_mode=const1),
            pl.BlockSpec((1, Dh), lambda bi, ni: (0, 0), pipeline_mode=const1),
            pl.BlockSpec((1, 1), lambda bi, ni: (0, 0), pipeline_mode=const1),
        ],
        out_specs=pl.BlockSpec((pl.Squeezed(), 1, TN), lambda bi, ni: (bi, 0, ni)),
        compiler_params=pltpu.CompilerParams(
            dimension_semantics=("parallel", "parallel"),
            vmem_limit_bytes=vmem_limit),
    )(x_p, params["aw_ln_g"], params["aw_ln_b"], params["aw_w1"], params["aw_b1"],
      params["aw_w2"], params["aw_b2"])
    w = w[:, 0, :N]                                                # (B, N), lane-dense

    # -------- top-k selection + gather (data-dependent sort -> JAX glue) --------
    if topk <= 0:
        idx = jnp.argsort(-w, axis=-1)                             # all, descending
        K = N
    else:
        _, idx = jax.lax.top_k(w, min(topk, N))                    # descending
        if topk > N:
            pad = jnp.repeat(idx[:, -1:], topk - N, axis=-1)       # repeat last index
            idx = jnp.concatenate([idx, pad], axis=-1)
        K = topk
    topk_w = jnp.take_along_axis(w, idx, axis=-1)                  # (B, K)
    topk_emb = jnp.take_along_axis(x, idx[..., None], axis=1)      # (B, K, D), unscaled:
    # the gate scaling is fused into transformer_kernel via row_w (saves an XLA pass).

    cls = jnp.broadcast_to(params["cls_token"], (B, 1, D)).astype(x.dtype)
    seq = jnp.concatenate([cls, topk_emb], axis=1)                 # (B, S, D)
    row_w = jnp.concatenate([jnp.ones((B, 1), jnp.float32), topk_w], axis=1)  # (B, S)
    S = K + 1

    # Pad sequence axis to a multiple of 8 (sublane); padded keys are masked in-kernel.
    Sp = ((S + 7) // 8) * 8
    if Sp != S:
        seq = jnp.pad(seq, ((0, 0), (0, Sp - S), (0, 0)))
        row_w = jnp.pad(row_w, ((0, 0), (0, Sp - S)))

    # Fold bags into the matmul M dimension (MXU occupancy): target M = TB*Sp ~ 512,
    # but keep >=2 grid steps when B >= 2 so both v7x TensorCores get work.
    TB = max(1, min(B, 512 // Sp)) if Sp <= 512 else 1
    if B >= 2:
        TB = min(TB, (B + 1) // 2)
    Bp = ((B + TB - 1) // TB) * TB
    if Bp != B:
        seq = jnp.pad(seq, ((0, Bp - B), (0, 0), (0, 0)))
        row_w = jnp.pad(row_w, ((0, Bp - B), (0, 0)))
    row_w = row_w[..., None]                                       # (Bp, Sp, 1)

    L = num_layers
    # TODO(synk): for very large D*L (weights ~ 16*L*D^2 bytes) the resident per-layer
    # weight stack should be streamed over a grid axis marked "arbitrary" to stay inside
    # v7x's 64 MiB VMEM; kept resident here since the stack is small.
    kern = functools.partial(transformer_kernel, num_layers=num_layers,
                             num_heads=num_heads, head_dim=Dh, seq_len=S)
    out = pl.pallas_call(
        kern,
        out_shape=jax.ShapeDtypeStruct((Bp, 1, D), jnp.float32),   # cls row only
        grid=(Bp // TB,),
        in_specs=[
            pl.BlockSpec((TB, Sp, 1), lambda i: (i, 0, 0)),        # per-row gate weights
            pl.BlockSpec((TB, Sp, D), lambda i: (i, 0, 0)),        # [cls ; top-k ; pad]
            pl.BlockSpec((1, D), lambda i: (0, 0), pipeline_mode=const1),
            pl.BlockSpec((1, D), lambda i: (0, 0), pipeline_mode=const1),
            pl.BlockSpec((L, D, D), lambda i: (0, 0, 0), pipeline_mode=const1),
            pl.BlockSpec((L, 1, D), lambda i: (0, 0, 0), pipeline_mode=const1),
            pl.BlockSpec((L, D, D), lambda i: (0, 0, 0), pipeline_mode=const1),
            pl.BlockSpec((L, 1, D), lambda i: (0, 0, 0), pipeline_mode=const1),
            pl.BlockSpec((L, D, D), lambda i: (0, 0, 0), pipeline_mode=const1),
            pl.BlockSpec((L, 1, D), lambda i: (0, 0, 0), pipeline_mode=const1),
            pl.BlockSpec((L, D, D), lambda i: (0, 0, 0), pipeline_mode=const1),
            pl.BlockSpec((L, 1, D), lambda i: (0, 0, 0), pipeline_mode=const1),
        ],
        out_specs=pl.BlockSpec((TB, 1, D), lambda i: (i, 0, 0)),
        compiler_params=pltpu.CompilerParams(
            dimension_semantics=("parallel",),
            vmem_limit_bytes=vmem_limit),
    )(row_w, seq, params["ln_g"], params["ln_b"],
      params["wq"], params["bq"], params["wk"], params["bk"],
      params["wv"], params["bv"], params["wo"], params["bo"])

    # dropout == identity at inference; the kernel already emitted only the cls row
    return out[:B, 0, :]                                           # (B, D)


if __name__ == "__main__":
    input_dim, num_heads, num_layers, topk = 32, 4, 2, 4
    B, N = 2, 8

    key = jax.random.PRNGKey(0)
    kp, kx = jax.random.split(key)
    params = init_params(kp, input_dim, num_heads, num_layers)
    x = jax.random.normal(kx, (B, N, input_dim), jnp.float32)

    out = abmil_forward(x, params, topk=topk,
                        num_heads=num_heads, num_layers=num_layers)
    out = jax.block_until_ready(out)
    assert out.shape == (B, input_dim) and bool(jnp.all(jnp.isfinite(out)))
    print("KERNEL_OK")
</pallas_src>

<mosaic_0001>
module attributes {stable_mosaic.version = 11 : i64} {
  func.func @score_kernel(%arg0: i32, %arg1: i32, %arg2: memref<1x8x32xf32, #tpu.memory_space<vmem>>, %arg3: memref<1x32xf32, #tpu.memory_space<vmem>>, %arg4: memref<1x32xf32, #tpu.memory_space<vmem>>, %arg5: memref<32x8xbf16, #tpu.memory_space<vmem>>, %arg6: memref<1x8xf32, #tpu.memory_space<vmem>>, %arg7: memref<1x8xbf16, #tpu.memory_space<vmem>>, %arg8: memref<1x1xf32, #tpu.memory_space<vmem>>, %arg9: memref<1x1x8xf32, #tpu.memory_space<vmem>>) attributes {dimension_semantics = [#tpu.dimension_semantics<parallel>, #tpu.dimension_semantics<parallel>], iteration_bounds = array<i64: 2, 1>, scalar_prefetch = 0 : i64, scratch_operands = 0 : i64, tpu.core_type = #tpu.core_type<tc>, window_params = [{transform_indices = @transform_0, window_bounds = array<i64: 1, 8, 32>}, {pipeline_mode = #tpu.pipeline_mode<synchronous>, transform_indices = @transform_1, window_bounds = array<i64: 1, 32>}, {pipeline_mode = #tpu.pipeline_mode<synchronous>, transform_indices = @transform_2, window_bounds = array<i64: 1, 32>}, {pipeline_mode = #tpu.pipeline_mode<synchronous>, transform_indices = @transform_3, window_bounds = array<i64: 32, 8>}, {pipeline_mode = #tpu.pipeline_mode<synchronous>, transform_indices = @transform_4, window_bounds = array<i64: 1, 8>}, {pipeline_mode = #tpu.pipeline_mode<synchronous>, transform_indices = @transform_5, window_bounds = array<i64: 1, 8>}, {pipeline_mode = #tpu.pipeline_mode<synchronous>, transform_indices = @transform_6, window_bounds = array<i64: 1, 1>}, {transform_indices = @transform_7, window_bounds = array<i64: 1, 1, 8>}]} {
    %c0 = arith.constant 0 : index
    %c0_0 = arith.constant 0 : index
    %c0_1 = arith.constant 0 : index
    %0 = vector.load %arg2[%c0, %c0_0, %c0_1] : memref<1x8x32xf32, #tpu.memory_space<vmem>>, vector<1x8x32xf32>
    %1 = vector.shape_cast %0 : vector<1x8x32xf32> to vector<8x32xf32>
    %c0_2 = arith.constant 0 : index
    %c0_3 = arith.constant 0 : index
    %2 = vector.load %arg3[%c0_2, %c0_3] : memref<1x32xf32, #tpu.memory_space<vmem>>, vector<1x32xf32>
    %c0_4 = arith.constant 0 : index
    %c0_5 = arith.constant 0 : index
    %3 = vector.load %arg4[%c0_4, %c0_5] : memref<1x32xf32, #tpu.memory_space<vmem>>, vector<1x32xf32>
    %cst = arith.constant dense<0.000000e+00> : vector<8xf32>
    %4 = vector.multi_reduction <add>, %1, %cst [1] : vector<8x32xf32> to vector<8xf32>
    %5 = vector.shape_cast %4 : vector<8xf32> to vector<8x1xf32>
    %cst_6 = arith.constant 3.200000e+01 : f32
    %6 = vector.broadcast %cst_6 : f32 to vector<8x1xf32>
    %7 = arith.divf %5, %6 : vector<8x1xf32>
    %8 = vector.broadcast %7 : vector<8x1xf32> to vector<8x32xf32>
    %9 = arith.subf %1, %8 : vector<8x32xf32>
    %10 = arith.mulf %9, %9 : vector<8x32xf32>
    %cst_7 = arith.constant dense<0.000000e+00> : vector<8xf32>
    %11 = vector.multi_reduction <add>, %10, %cst_7 [1] : vector<8x32xf32> to vector<8xf32>
    %12 = vector.shape_cast %11 : vector<8xf32> to vector<8x1xf32>
    %cst_8 = arith.constant 3.200000e+01 : f32
    %13 = vector.broadcast %cst_8 : f32 to vector<8x1xf32>
    %14 = arith.divf %12, %13 : vector<8x1xf32>
    %15 = vector.broadcast %7 : vector<8x1xf32> to vector<8x32xf32>
    %16 = arith.subf %1, %15 : vector<8x32xf32>
    %cst_9 = arith.constant 9.99999974E-6 : f32
    %17 = vector.broadcast %cst_9 : f32 to vector<8x1xf32>
    %18 = arith.addf %14, %17 : vector<8x1xf32>
    %19 = math.rsqrt %18 : vector<8x1xf32>
    %20 = vector.broadcast %19 : vector<8x1xf32> to vector<8x32xf32>
    %21 = arith.mulf %16, %20 : vector<8x32xf32>
    %22 = vector.broadcast %2 : vector<1x32xf32> to vector<8x32xf32>
    %23 = arith.mulf %21, %22 : vector<8x32xf32>
    %24 = vector.broadcast %3 : vector<1x32xf32> to vector<8x32xf32>
    %25 = arith.addf %23, %24 : vector<8x32xf32>
    %26 = arith.truncf %25 : vector<8x32xf32> to vector<8x32xbf16>
    %c0_10 = arith.constant 0 : index
    %c0_11 = arith.constant 0 : index
    %27 = vector.load %arg5[%c0_10, %c0_11] : memref<32x8xbf16, #tpu.memory_space<vmem>>, vector<32x8xbf16>
    %cst_12 = arith.constant dense<0.000000e+00> : vector<8x8xf32>
    %28 = tpu.matmul %26, %27, %cst_12 {dimension_numbers = #tpu.dot_dimension_numbers<[1], [0], [0], [1], [0, 0, 1, 1], [], []>} : vector<8x32xbf16>, vector<32x8xbf16>, vector<8x8xf32> -> vector<8x8xf32>
    %c0_13 = arith.constant 0 : index
    %c0_14 = arith.constant 0 : index
    %29 = vector.load %arg6[%c0_13, %c0_14] : memref<1x8xf32, #tpu.memory_space<vmem>>, vector<1x8xf32>
    %30 = vector.broadcast %29 : vector<1x8xf32> to vector<8x8xf32>
    %31 = arith.addf %28, %30 : vector<8x8xf32>
    %32 = arith.mulf %31, %31 : vector<8x8xf32>
    %33 = arith.mulf %31, %32 : vector<8x8xf32>
    %cst_15 = arith.constant 4.471500e-02 : f32
    %34 = vector.broadcast %cst_15 : f32 to vector<8x8xf32>
    %35 = arith.mulf %34, %33 : vector<8x8xf32>
    %36 = arith.addf %31, %35 : vector<8x8xf32>
    %cst_16 = arith.constant 0.797884583 : f32
    %37 = vector.broadcast %cst_16 : f32 to vector<8x8xf32>
    %38 = arith.mulf %37, %36 : vector<8x8xf32>
    %39 = math.tanh %38 : vector<8x8xf32>
    %cst_17 = arith.constant 1.000000e+00 : f32
    %40 = vector.broadcast %cst_17 : f32 to vector<8x8xf32>
    %41 = arith.addf %40, %39 : vector<8x8xf32>
    %cst_18 = arith.constant 5.000000e-01 : f32
    %42 = vector.broadcast %cst_18 : f32 to vector<8x8xf32>
    %43 = arith.mulf %42, %41 : vector<8x8xf32>
    %44 = arith.mulf %31, %43 : vector<8x8xf32>
    %c0_19 = arith.constant 0 : index
    %c0_20 = arith.constant 0 : index
    %45 = vector.load %arg7[%c0_19, %c0_20] : memref<1x8xbf16, #tpu.memory_space<vmem>>, vector<1x8xbf16>
    %46 = arith.truncf %44 : vector<8x8xf32> to vector<8x8xbf16>
    %cst_21 = arith.constant dense<0.000000e+00> : vector<1x8xf32>
    %47 = tpu.matmul %45, %46, %cst_21 {dimension_numbers = #tpu.dot_dimension_numbers<[1], [1], [0], [0], [0, 0, 1, 0], [], []>} : vector<1x8xbf16>, vector<8x8xbf16>, vector<1x8xf32> -> vector<1x8xf32>
    %c0_22 = arith.constant 0 : index
    %c0_23 = arith.constant 0 : index
    %48 = vector.load %arg8[%c0_22, %c0_23] : memref<1x1xf32, #tpu.memory_space<vmem>>, vector<1x1xf32>
    %49 = vector.broadcast %48 : vector<1x1xf32> to vector<1x8xf32>
    %50 = arith.addf %47, %49 : vector<1x8xf32>
    %51 = arith.negf %50 : vector<1x8xf32>
    %52 = math.exp %51 : vector<1x8xf32>
    %cst_24 = arith.constant 1.000000e+00 : f32
    %53 = vector.broadcast %cst_24 : f32 to vector<1x8xf32>
    %54 = arith.addf %53, %52 : vector<1x8xf32>
    %55 = arith.divf %53, %54 : vector<1x8xf32>
    %c0_25 = arith.constant 0 : index
    %c0_26 = arith.constant 0 : index
    %c0_27 = arith.constant 0 : index
    %56 = vector.load %arg9[%c0_25, %c0_26, %c0_27] : memref<1x1x8xf32, #tpu.memory_space<vmem>>, vector<1x1x8xf32>
    %57 = vector.shape_cast %56 : vector<1x1x8xf32> to vector<1x8xf32>
    %58 = vector.shape_cast %55 : vector<1x8xf32> to vector<1x1x8xf32>
    tpu.vector_store %arg9[%c0_25, %c0_26, %c0_27], %58 {strides = array<i32>} : memref<1x1x8xf32, #tpu.memory_space<vmem>>, vector<1x1x8xf32>,
    return
  }
  func.func @transform_0(%arg0: i32, %arg1: i32) -> (i32, i32, i32) {
    %c0_i32 = arith.constant 0 : i32
    %c0_i32_0 = arith.constant 0 : i32
    return %arg0, %arg1, %c0_i32 : i32, i32, i32
  }
  func.func @transform_1(%arg0: i32, %arg1: i32) -> (i32, i32) {
    %c0_i32 = arith.constant 0 : i32
    %c0_i32_0 = arith.constant 0 : i32
    %c0_i32_1 = arith.constant 0 : i32
    return %c0_i32, %c0_i32_0 : i32, i32
  }
  func.func @transform_2(%arg0: i32, %arg1: i32) -> (i32, i32) {
    %c0_i32 = arith.constant 0 : i32
    %c0_i32_0 = arith.constant 0 : i32
    %c0_i32_1 = arith.constant 0 : i32
    return %c0_i32, %c0_i32_0 : i32, i32
  }
  func.func @transform_3(%arg0: i32, %arg1: i32) -> (i32, i32) {
    %c0_i32 = arith.constant 0 : i32
    %c0_i32_0 = arith.constant 0 : i32
    %c0_i32_1 = arith.constant 0 : i32
    return %c0_i32, %c0_i32_0 : i32, i32
  }
  func.func @transform_4(%arg0: i32, %arg1: i32) -> (i32, i32) {
    %c0_i32 = arith.constant 0 : i32
    %c0_i32_0 = arith.constant 0 : i32
    %c0_i32_1 = arith.constant 0 : i32
    return %c0_i32, %c0_i32_0 : i32, i32
  }
  func.func @transform_5(%arg0: i32, %arg1: i32) -> (i32, i32) {
    %c0_i32 = arith.constant 0 : i32
    %c0_i32_0 = arith.constant 0 : i32
    %c0_i32_1 = arith.constant 0 : i32
    return %c0_i32, %c0_i32_0 : i32, i32
  }
  func.func @transform_6(%arg0: i32, %arg1: i32) -> (i32, i32) {
    %c0_i32 = arith.constant 0 : i32
    %c0_i32_0 = arith.constant 0 : i32
    %c0_i32_1 = arith.constant 0 : i32
    return %c0_i32, %c0_i32_0 : i32, i32
  }
  func.func @transform_7(%arg0: i32, %arg1: i32) -> (i32, i32, i32) {
    %c0_i32 = arith.constant 0 : i32
    %c0_i32_0 = arith.constant 0 : i32
    return %arg0, %c0_i32, %arg1 : i32, i32, i32
  }
}

</mosaic_0001>

<bundles_post_ra>
// kernel: tpu_custom_call.1
= control target key start
LH: loop header
LB: loop body
LE: loop exit
PB: predicated region body
PF: predicated region fallthrough
CT: control target
= control target key end

     0   :  { %s923_s0 = inlined_call_operand.vmem [shape: f32[2,8,32], index: 0, kind: input, shape index: {}]   ;;  %s924_s1 = inlined_call_operand.vmem [shape: f32[1,32], index: 1, kind: input, shape index: {}]   ;;  %s925_s2 = inlined_call_operand.vmem [shape: f32[1,32], index: 2, kind: input, shape index: {}]   ;;  %s926_s3 = inlined_call_operand.vmem [shape: bf16[32,8], index: 3, kind: input, shape index: {}]   ;;  %s927_s4 = inlined_call_operand.vmem [shape: f32[1,8], index: 4, kind: input, shape index: {}]   ;;  %s928_s5 = inlined_call_operand.vmem [shape: bf16[1,8], index: 5, kind: input, shape index: {}]   ;;  %s929_s6 = inlined_call_operand.<no memory space> [shape: f32[1,1], index: 6, kind: input, shape index: {}]   ;;  %s930_s7 = inlined_call_operand.hbm [shape: f32[2,1,8], index: 7, kind: output, shape index: {}]  }
   0x1   :  { %v12_v0 = vstv %s929_s6 }
   0x2   :  { %13 = vst [vmem:[#allocation2] sm:$0x1] %v12_v0 }
   0x3   :  { %14 = vsyncpa [#allocation4], 0 }
   0x4   :  { %16 = vsyncpa [#allocation4 + $0x1], 0  ;;  %s790_s26 = smov 0   ;;  %s792_s27 = smov 0  }
   0x5   :  { %s794_s28 = smov 0   ;;  %s796_s29 = smov 0  }
   0x6   :  { %s798_s30 = smov 0   ;;  %s800_s8 = smov 0  }
   0x7 LB: > { %s557_s6 = sadd.s32 4294967295, %s741_s8   ;;  %s558_s9 = sadd.s32 4294967294, %s741_s8   ;;  %s741_s8 = sphi %s800_s8, %s22_s8   ;;  %s737_s30 = sphi %s798_s30, %s937_s30   ;;  %s733_s29 = sphi %s796_s29, %s936_s29   ;;  %s729_s28 = sphi %s794_s28, %s935_s28   ;;  %s725_s27 = sphi %s792_s27, %s934_s27   ;;  %s721_s26 = sphi %s790_s26, %s933_s26  }
   0x8   : > { %s34_s10 = sadd.s32 1, %s737_s30  ;;  %s197_s11 = sadd.s32 1, %s729_s28 }
   0x9   : > { %p36_p0 = scmp.ge.s32.totalorder %s34_s10, 2  ;;  %p207_p1 = scmp.ne.s32.totalorder %s729_s28, %s725_s27 }
   0xa   : > { %p208_p2 = scmp.eq.s32.totalorder %s557_s6, 1  ;;  %p213_p3 = scmp.ne.s32.totalorder %s725_s27, %s721_s26 }
   0xb   : > { %s939_s10 = smov (%p36_p0, %s34_s10), 0  ;;  %p214_p5 = scmp.eq.s32.totalorder %s558_s9, 1 }
   0xc   : > { %p830_p4 = por %p208_p2, %p207_p1  ;;  %s192_s13 = ssub.s32 %s737_s30, %s939_s10 }
   0xd   : > { %p561_p6 = scmp.ge.s32.totalorder %s741_s8, 1  ;;  %p195_p7 = scmp.eq.s32.totalorder %s192_s13, 0 }
   0xe   : > { %p837_p8 = por %p214_p5, %p213_p3  ;;  %p260_p9 = scmp.lt.s32.totalorder %s741_s8, 3 }
   0xf   : > { %s843_s15 = scalar_select %p195_p7, %s729_s28, %s197_s11  }
  0x10   : > { %p261_p10 = pnand %p561_p6, %p260_p9 }
  0x11   : > { %p293_p11 = scmp.lt.s32.totalorder (!%p261_p10), %s733_s29, 1  ;;  %vm304_vm0 = vcmask (!%p261_p10), 261120   ;;  %v653_v8 = vld [vmem:[%s926_s3] sm:$0xff] (!%p261_p10)   ;;  %v743_v9 = vmov (!%p261_p10), 0.0   ;;  %v654_v10 = vld [vmem:[%s926_s3 + $0x8] sm:$0xff] (!%p261_p10)   ;;  %vm744_vm1 = vmmov (!%p261_p10), 0   ;;  %v417_v41 = vlaneseq (!%p261_p10) }
  0x12   : > { %264 = sbr.rel (%p261_p10) target bundleno = 850 (0x352), region = 48  ;;  %579 = vmatprep.subr.bf16.mxu0 (!%p261_p10), %v743_v9  ;;  %587 = vmatprep.subr.bf16.mxu1 (!%p261_p10), %v743_v9  ;;  %v563_v15 = vld [vmem:[%s924_s1] ss:$0 sm:$0xff] (!%p261_p10)  ;;  %v745_v22 = vmov (!%p261_p10), 0   ;;  %vm421_vm2 = vcmask (!%p261_p10), 64512   ;;  %s291_s19 = sand.u32 (!%p261_p10), 1, %s725_s27  }
  0x13   : > { %580 = vmatpush3.bf16.msra.mxu0 (!%p261_p10), %v653_v8  ;;  %583 = vmatprep.mubr.msk.bf16.mxu0 (!%p261_p10), %vm744_vm1, %v743_v9  ;;  %v564_v17 = vld [vmem:[%s925_s2] ss:$0 sm:$0xff] (!%p261_p10)  ;;  %v418_v42 = vshrl.u32 (!%p261_p10), %v417_v41, 7  ;;  %s292_s21 = scalar_lea.vmem (!%p261_p10), [#allocation3], %s291_s19  ;;  %vm474_vm3 = vcmask (!%p261_p10), 57344   ;;  %s477_s6 = scalar_lea.sflag (!%p261_p10), [#allocation4], %s291_s19 }
  0x14   : > { %581 = vmatprep.subr.bf16.mxu0 (!%p261_p10), %v743_v9  ;;  %589 = vmatprep.mubr.msk.bf16.mxu1 (!%p261_p10), %vm744_vm1, %v743_v9  ;;  %v411_v21 = vld [vmem:[#allocation2] sm:$0x1] (!%p261_p10)  ;;  %s490_s22 = sshll.u32 (!%p261_p10), %s292_s21, 4  ;;  %s878_s22 = int_to_ptr.vmem [resolvable:$true] %s490_s22 }
  0x15   : > { %651 = vset.pattern.permute.xlu1 (!%p261_p10), %v745_v22  ;;  %652 = vset.pattern.permute.xlu0 (!%p261_p10), %v745_v22  ;;  %v565_v23 = vld [vmem:[%s927_s4] ss:$0 sm:$0xff] (!%p261_p10)  ;;  %v419_v43 = vsub.s32 (!%p261_p10), 0, %v418_v42  ;;  %s663_s9 = scalar_lea.vmem (!%p261_p10), %s878_s22, 16 }
  0x16   : > { %414 = vperm.xlu1 (!%p261_p10), %651, %v411_v21   ;;  %v409_v40 = vld [vmem:[%s928_s5] sm:$0x1] (!%p261_p10)  ;;  %p664_p12 = scmp.ne.s32.totalorder (!%p261_p10), %s878_s22, %s663_s9 }
  0x17   : > { %582 = vmatpush3.bf16.msra.mxu0 (!%p261_p10), %v654_v10 }
  0x18   : > { %p665_p13 = pnand (!%p261_p10), %p664_p12, %p830_p4 }
  0x19   : > { %s294_s16 = scalar_select %p293_p11, %s733_s29, 1 }
  0x1a   : > { %p666_p0 = pneg %p665_p13 }
  0x1b   : > { %s562_s17 = sshll.u32 %s294_s16, 3 }
  0x1c   : > { %s299_s20 = scalar_lea.vmem %s923_s0, %s562_s17 }
  0x1d   : > { %v301_v1 = vld [vmem:[%s299_s20] sm:$0xff]  ;;  %s571_s20 = sshll.u32 %s733_s29, 4  ;;  %s746_s29 = smov [#allocation3]  }
  0x1e   : > { %v305_v2 = vsel %vm304_vm0, %v301_v1, 0.0  ;;  %s876_s25 = scalar_lea.hbm %s930_s7, %s571_s20  ;;  %s667_s11 = sshll.u32 %s746_s29, 4  ;;  %s668_s11 = int_to_ptr.vmem [resolvable:$false] %s667_s11 }
  0x1f   : > { %306 = vadd.xlane.f32.xlu0 %v305_v2  ;;  %s669_s13 = scalar_lea.vmem %s668_s11, 32  ;;  %p670_p1 = scmp.lt.s32.totalorder %s878_s22, %s668_s11 }
  0x20   : > { %p671_p2 = scmp.lt.s32.totalorder %s669_s13, %s663_s9 }
  0x22   : > { %p672_p3 = por %p671_p2, %p670_p1 }
  0x24   : > { %p673_p5 = pnand %p672_p3, %p666_p0 }
  0x95   : > { %v415_v44 = vpop.permute.xlu1 %414 }
  0x96   : > { %v420_v45 = vrot.slane %v415_v44, %v419_v43 }
  0xac   : > { %v307_v3 = vpop.xlane.xlu0 %306 }
  0xad   : > { %v309_v4 = vmul.f32 0.03125, %v307_v3 }
  0xaf   : > { %v310_v5 = vsub.f32 %v301_v1, %v309_v4 }
  0xb1   : > { %v311_v6 = vmul.f32 %v310_v5, %v310_v5 }
  0xb3   : > { %v312_v7 = vsel %vm304_vm0, %v311_v6, 0.0 }
  0xb4   : > { %313 = vadd.xlane.f32.xlu0 %v312_v7 }
 0x141   : > { %v314_v11 = vpop.xlane.xlu0 %313 }
 0x142   : > { %v315_v12 = vmul.f32 0.03125, %v314_v11 }
 0x144   : > { %v316_v13 = vadd.f32 1e-05, %v315_v12 }
 0x146   : > { %655 = vrsqrt.f32 %v316_v13 }
 0x150   : > { %v656_v14 = vpop.eup %655 }
 0x151   : > { %v318_v16 = vmul.f32 %v656_v14, %v310_v5 }
 0x153   : > { %v325_v18 = vmul.f32 %v563_v15, %v318_v16 }
 0x155   : > { %v332_v19 = vadd.f32 %v564_v17, %v325_v18 }
 0x157   : > { %v333_v20 = vpack.c.bf16 %v332_v19, %v332_v19 }
 0x159   : > { %584 = vmatmul.mubr.msk.bf16.vlgmr.msra.gmra.mrb[0].mxu0 %vm304_vm0, %v333_v20 }
 0x22c   : > { %v394_v24 = vpop.f32.mrb[0].mxu0 }
 0x22d   : > { %v395_v25 = vadd.f32 %v565_v23, %v394_v24  ;;  %v585_v26 = vpop.f32.mrb[1].mxu0 }
 0x22e   : > { %v397_v27 = vpop.f32.mrb[2].mxu0 }
 0x22f   : > { %v400_v28 = vmul.f32 %v395_v25, %v395_v25  ;;  %v586_v29 = vpop.f32.mrb[3].mxu0 }
 0x231   : > { %v401_v30 = vmul.f32 %v400_v28, %v395_v25 }
 0x233   : > { %v402_v31 = vmul.f32 0.044715, %v401_v30 }
 0x235   : > { %v403_v32 = vadd.f32 %v402_v31, %v395_v25 }
 0x237   : > { %v404_v33 = vmul.f32 0.7978846, %v403_v32 }
 0x239   : > { %657 = vtanh.f32 %v404_v33 }
 0x243   : > { %v658_v34 = vpop.eup %657 }
 0x244   : > { %v406_v35 = vadd.f32 1.0, %v658_v34 }
 0x246   : > { %v407_v36 = vmul.f32 0.5, %v406_v35 }
 0x248   : > { %v408_v37 = vmul.f32 %v407_v36, %v395_v25 }
 0x24a   : > { %v410_v38 = vpack.c.bf16 %v408_v37, %v408_v37 }
 0x24c   : > { %v426_v39 = vsel %vm421_vm2, %v410_v38, 0 }
 0x24d   : > { %588 = vmatpush3.bf16.xpose.msra.mxu1 %v426_v39 }
 0x254   : > { %590 = vmatmul.mubr.msk.bf16.vlgmr.msra.gmra.mrb[0].mxu1 %vm421_vm2, %v409_v40 }
 0x327   : > { %v462_v46 = vpop.f32.mrb[0].mxu1 }
 0x328   : > { %v463_v47 = vadd.f32 %v462_v46, %v420_v45  ;;  %v591_v48 = vpop.f32.mrb[1].mxu1 }
 0x329   : > { %v465_v49 = vpop.f32.mrb[2].mxu1 }
 0x32a   : > { %v570_v50 = vmul.f32 -1.442695, %v463_v47  ;;  %v592_v51 = vpop.f32.mrb[3].mxu1 }
 0x32c   : > { %659 = vpow2.f32 %v570_v50 }
 0x336   : > { %v660_v52 = vpop.eup %659 }
 0x337   : > { %v471_v53 = vadd.f32 1.0, %v660_v52 }
 0x339   : > { %661 = vrcp.f32 %v471_v53 }
 0x343   : > { %v662_v54 = vpop.eup %661 }
 0x344   : > { %475 = vst.msk [vmem:[%s292_s21] sm:$0x1] %vm474_vm3, %v662_v54 }
 0x345   : > { %676 = shalt.err (!%p673_p5)
}
 0x346   : > { %s677_s16 = scalar_lea.hbm %s876_s25, 16  ;;  %s681_s19 = scalar_lea.hbm %s930_s7, 32 }
 0x347   : > { %p678_p6 = scmp.ne.s32.totalorder %s876_s25, %s677_s16  ;;  %p682_p10 = scmp.lt.u32.totalorder %s876_s25, %s930_s7 }
 0x348   : > { %p683_p11 = scmp.lt.u32.totalorder %s681_s19, %s677_s16  ;;  %p685_p13 = scmp.lt.u32.totalorder %s677_s16, %s876_s25 }
 0x349   : > { %p679_p7 = pnand %p678_p6, %p830_p4 }
 0x34a   : > { %p684_p12 = por %p683_p11, %p682_p10 }
 0x34b   : > { %p680_p9 = pneg %p679_p7 }
 0x34c   : > { %p686_p0 = por %p685_p13, %p684_p12 }
 0x34e   : > { %p687_p1 = pnand %p686_p0, %p680_p9 }
 0x350   : > { %690 = shalt.err (!%p687_p1)
}
 0x351   : > { %593 = dma.vmem_to_hbm [thread:$0]  (%p830_p4), %s878_s22, 16, %s876_s25, %s477_s6  }
 0x352 PF: > { %p599_p2 = scmp.ge.s32.totalorder %s741_s8, 2  ;;  %s502_s23 = sand.u32 1, %s721_s26  }
 0x353   : > { %s503_s24 = scalar_lea.sflag [#allocation4], %s502_s23 }
 0x354   : > { %p596_p3 = pnand %p599_p2, %p837_p8 }
 0x356   : > { %716 = dma.done.wait (!%p596_p3), %s503_s24, 16  }
 0x357   : > { %718 = vsyncadd (!%p596_p3), %s503_s24, 4294967280  ;;  %s22_s8 = sadd.s32 1, %s741_s8   ;;  %s933_s26 = smov %s725_s27 }
 0x358   : > { %p19_p5 = scmp.ge.s32.totalorder %s22_s8, 4   ;;  %s934_s27 = smov %s729_s28 }
 0x359   : > { %s935_s28 = smov %s843_s15  ;;  %s936_s29 = smov %s737_s30 }
 0x35a   : > { %s937_s30 = smov %s939_s10  ;;  %21 = sbr.rel (!%p19_p5) target bundleno = 7 (0x7), region = 83 }
 0x361   :  { %507 = vsyncpa [#allocation4], 1 }
 0x362   :  { %509 = vsyncpa [#allocation4 + $0x1], 1 }

</bundles_post_ra>
